<compile_context>
chip_gen: v5e
topology: v5e:2x2
jax: 0.10.0
libtpu: 0.0.40
codegen_flags: <defaults>
</compile_context>

<pallas_src>
import functools

import jax
import jax.numpy as jnp
from jax import lax
from jax.experimental import pallas as pl
from jax.experimental.pallas import tpu as pltpu


def _relayout_band(band, w_cnt, c_t, k):
    """(c_t, k, w_cnt*k) laid out (c, r, iw*k+col) -> (w_cnt, c_t*k*k) laid out
    (iw, c*k*k + r*k + col).

    Mosaic lowers only 2-D transposes and last-two-dim swaps, so the relayout
    is expressed as one minor swap (bring `col` in front of `iw`) followed by
    one group-swap 2-D transpose; the reshapes are regroupings around them.
    """
    ckk = c_t * k * k
    if w_cnt == 1:
        # Degenerate width (only reachable when W <= k or W == k): row-major
        # flatten is already the target lane order.
        return band.reshape(1, ckk)
    y = band.reshape(c_t * k, w_cnt, k)   # (c*r, iw, col)
    y = jnp.swapaxes(y, 1, 2)             # (c*r, col, iw)   minor-dim swap
    y = y.reshape(ckk, w_cnt)             # (c*r*col, iw)
    return y.T                            # (iw, c*r*col)    2-D transpose


def _s2b_kernel(x_ref, o_ref, *scratch, k, H, W, c_t):
    # x_ref : (1, c_t, H, W)          unpadded input block (VMEM)
    # o_ref : (1, n_h*n_w, c_t*k*k)   lane-dense output block (VMEM)
    # scratch: at most one (c_t, k, Wp|W) band buffer; only allocated when the
    #          image is not k-divisible (right-pad / bottom-band handling).
    full_h, rem_h = divmod(H, k)
    full_w, rem_w = divmod(W, k)
    pad_w = (k - rem_w) if rem_w else k
    Wp = W + pad_w
    n_w = full_w + 1                      # PyTorch pads a full extra k patch
    ckk = c_t * k * k
    dt = o_ref.dtype

    band_ref = scratch[0] if scratch else None

    # --- Static column split --------------------------------------------
    # Patch columns [0, direct_p) are relayouted straight from x_ref (no
    # staging).  The trailing stage_p patch columns (those touching the right
    # zero pad) go through the band scratch so their pad lanes exist.
    if rem_w > 0:
        stage_p = 2 if full_w >= 3 else full_w + 1   # keep relayout widths != 1
        direct_p = n_w - stage_p
    else:
        stage_p = 0
        direct_p = full_w                 # last patch column is a pure zero row
    direct_w = direct_p * k

    if rem_w > 0:
        # Right-pad lanes: zeroed once per invocation; per-band copies below
        # only ever overwrite [:, :, :W].
        band_ref[:, :, W:] = jnp.zeros((c_t, k, pad_w), dt)

    # Hoisted constant (JAX does not CSE broadcast_in_dim inside the loop).
    zeros_row = jnp.zeros((1, ckk), dt) if rem_w == 0 else None

    def emit_full_band(ih):
        row0 = pl.multiple_of(ih * k, k)
        base = ih * n_w
        if direct_p > 0:
            band = x_ref[0, :, pl.ds(row0, k), :direct_w]
            o_ref[0, pl.ds(base, direct_p), :] = (
                _relayout_band(band, direct_p, c_t, k).astype(dt))
        if rem_w > 0:
            # Stage only the pad-touching columns (small copy), then relayout
            # them together with the pre-zeroed pad lanes.
            band_ref[:, :, direct_w:W] = x_ref[0, :, pl.ds(row0, k), direct_w:]
            staged = band_ref[:, :, direct_w:]
            o_ref[0, pl.ds(base + direct_p, stage_p), :] = (
                _relayout_band(staged, stage_p, c_t, k).astype(dt))
        else:
            # Right pad is a full extra zero patch column.
            o_ref[0, pl.ds(base + full_w, 1), :] = zeros_row

    if full_h > 0:
        def body(ih, carry):
            emit_full_band(ih)
            return carry
        lax.fori_loop(0, full_h, body, 0,
                      unroll=full_h if full_h <= 8 else 4)

    # --- Bottom band (always exists: full extra k is padded when H % k == 0)
    base = full_h * n_w
    if rem_h == 0:
        o_ref[0, pl.ds(base, n_w), :] = jnp.zeros((n_w, ckk), dt)
    else:
        # Partial band: stage the bottom sliver once, zero-fill missing rows.
        band_ref[:, :rem_h, :W] = x_ref[0, :, full_h * k:, :]
        band_ref[:, rem_h:, :W] = jnp.zeros((c_t, k - rem_h, W), dt)
        if rem_w > 0:
            o_ref[0, pl.ds(base, n_w), :] = (
                _relayout_band(band_ref[...], n_w, c_t, k).astype(dt))
        else:
            o_ref[0, pl.ds(base, full_w), :] = (
                _relayout_band(band_ref[:, :, :W], full_w, c_t, k).astype(dt))
            o_ref[0, pl.ds(base + full_w, 1), :] = zeros_row


def _vmem_capacity_bytes():
    """Per-core VMEM capacity (generation-aware), with a conservative fallback."""
    cap = 128 * 1024 * 1024
    try:
        info = pltpu.get_tpu_info()
        cap = int(getattr(info, "vmem_capacity_bytes", cap))
    except Exception:
        pass
    return max(cap, 32 * 1024 * 1024)


def _choose_channel_chunk(C, k, H, W, Hp, Wp, scratch_w, itemsize, need_scratch,
                          budget):
    """Largest channel chunk c_t that divides C, keeps the output block's last
    dim lane-aligned (c_t*k*k % 128 == 0, or c_t == C), and fits the per-step
    VMEM budget (2x double-buffered input + 2x output + band scratch)."""
    per_c = (2 * H * W + 2 * Hp * Wp
             + (k * scratch_w if need_scratch else 0)) * itemsize
    divisors = [d for d in range(1, C + 1) if C % d == 0]
    lane_ok = [d for d in divisors if d == C or (d * k * k) % 128 == 0]
    fitting = [d for d in lane_ok if d * per_c <= budget]
    # TODO(synk): if nothing fits (very large H*W), add an nH-band grid axis
    # instead of falling back to the smallest lane-aligned chunk.
    c_t = max(fitting) if fitting else min(lane_ok)
    return c_t, c_t * per_c


def space2batch(x, kernel_size):
    """Pallas implementation of Space2Batch.forward.

    Returns (patches, B, C, H, W, pad_h, pad_w) exactly like the PyTorch module.
    """
    B, C, H, W = x.shape
    k = int(kernel_size)
    # PyTorch semantics: pads a *full* extra k even when H % k == 0.
    pad_h = k - H % k
    pad_w = k - W % k
    Hp, Wp = H + pad_h, W + pad_w
    n_h, n_w = Hp // k, Wp // k
    itemsize = jnp.dtype(x.dtype).itemsize
    need_scratch = (H % k != 0) or (W % k != 0)
    scratch_w = Wp if (W % k != 0) else W   # pad lanes only needed if W % k != 0

    cap = _vmem_capacity_bytes()
    # Big blocks amortize the ~0.35us/step grid overhead and reach the HBM
    # roofline, but leave 16 MiB headroom (v7x: 64 MiB/TC; v5e/v6e: 128 MiB).
    budget = min(cap - (16 << 20), 48 << 20)
    c_t, vmem_needed = _choose_channel_chunk(
        C, k, H, W, Hp, Wp, scratch_w, itemsize, need_scratch, budget)
    n_cc = C // c_t

    # Always set an explicit scoped-VMEM limit (v5e default is only 16 MiB),
    # clamped safely below physical per-core capacity.
    vmem_limit = int(min(max(vmem_needed + (8 << 20), 24 << 20), cap - (8 << 20)))

    kernel = functools.partial(_s2b_kernel, k=k, H=H, W=W, c_t=c_t)

    scratch_shapes = []
    if need_scratch:
        scratch_shapes.append(pltpu.VMEM((c_t, k, scratch_w), x.dtype))

    out = pl.pallas_call(
        kernel,
        out_shape=jax.ShapeDtypeStruct((B, n_h * n_w, C * k * k), x.dtype),
        grid_spec=pltpu.PrefetchScalarGridSpec(
            num_scalar_prefetch=0,
            grid=(B, n_cc),
            # Unpadded input slab; last two dims equal the full array dims,
            # so the block is layout-safe for any c_t.
            in_specs=[pl.BlockSpec((1, c_t, H, W), lambda b, cc: (b, cc, 0, 0))],
            # Lane-dense flattened output; last dim is a multiple of 128 (or
            # the full C*k*k when c_t == C).
            out_specs=pl.BlockSpec((1, n_h * n_w, c_t * k * k),
                                   lambda b, cc: (b, 0, cc)),
            scratch_shapes=scratch_shapes,
        ),
        compiler_params=pltpu.CompilerParams(
            dimension_semantics=("parallel", "parallel"),
            vmem_limit_bytes=vmem_limit),
        cost_estimate=pl.CostEstimate(
            flops=0, transcendentals=0,
            bytes_accessed=int(B * C * (H * W + Hp * Wp) * itemsize)),
    )(x)

    # Glue reshape: (B, nH*nW, C*k*k) -> (B*nH*nW, C, k, k); row-major order
    # already matches unfold(...).permute(0, 2, 1).view(...).
    patches = out.reshape(B * n_h * n_w, C, k, k)
    return patches, B, C, H, W, pad_h, pad_w


def _reference(x, kernel_size):
    """Pure-JAX reference reproducing the PyTorch forward exactly."""
    B, C, H, W = x.shape
    k = kernel_size
    pad_h = k - H % k
    pad_w = k - W % k
    xp = jnp.pad(x, ((0, 0), (0, 0), (0, pad_h), (0, pad_w)))
    n_h, n_w = (H + pad_h) // k, (W + pad_w) // k
    xp = xp.reshape(B, C, n_h, k, n_w, k)
    xp = jnp.transpose(xp, (0, 2, 4, 1, 3, 5))  # (B, nH, nW, C, k, k)
    return xp.reshape(B * n_h * n_w, C, k, k), B, C, H, W, pad_h, pad_w


def _check(key, B, C, H, W, kernel_size):
    x = jax.random.normal(key, (B, C, H, W), dtype=jnp.float32)
    out = space2batch(x, kernel_size)
    patches = jax.block_until_ready(out[0])
    ref = _reference(x, kernel_size)
    assert patches.shape == ref[0].shape, (patches.shape, ref[0].shape)
    assert out[1:] == ref[1:], (out[1:], ref[1:])
    assert bool(jnp.array_equal(patches, ref[0])), "mismatch vs reference"


if __name__ == "__main__":
    key = jax.random.PRNGKey(0)
    k0, k1 = jax.random.split(key)

    # Divisible spatial dims -> full extra-k padding path, no scratch at all.
    _check(k0, 2, 4, 16, 16, 4)
    # Non-divisible spatial dims -> staged right-pad columns + partial bottom band.
    _check(k1, 2, 4, 15, 13, 4)

    print("KERNEL_OK")
</pallas_src>

<mosaic_0001>
module attributes {stable_mosaic.version = 11 : i64} {
  func.func @_s2b_kernel(%arg0: i32, %arg1: i32, %arg2: memref<1x4x16x16xf32, #tpu.memory_space<vmem>>, %arg3: memref<1x25x64xf32, #tpu.memory_space<vmem>>) attributes {dimension_semantics = [#tpu.dimension_semantics<parallel>, #tpu.dimension_semantics<parallel>], iteration_bounds = array<i64: 2, 1>, scalar_prefetch = 0 : i64, scratch_operands = 0 : i64, tpu.core_type = #tpu.core_type<tc>, window_params = [{transform_indices = @transform_0, window_bounds = array<i64: 1, 4, 16, 16>}, {transform_indices = @transform_1, window_bounds = array<i64: 1, 25, 64>}]} {
    %cst = arith.constant 0.000000e+00 : f32
    %0 = vector.broadcast %cst : f32 to vector<1x64xf32>
    %c0_i32 = arith.constant 0 : i32
    %c4_i32 = arith.constant 4 : i32
    %1 = arith.muli %c0_i32, %c4_i32 : i32
    %2 = tpu.assume_multiple %1, 4 : i32
    %c5_i32 = arith.constant 5 : i32
    %3 = arith.muli %c0_i32, %c5_i32 : i32
    %c0 = arith.constant 0 : index
    %c0_0 = arith.constant 0 : index
    %4 = arith.index_cast %2 : i32 to index
    %c0_1 = arith.constant 0 : index
    %5 = vector.load %arg2[%c0, %c0_0, %4, %c0_1] : memref<1x4x16x16xf32, #tpu.memory_space<vmem>>, vector<1x4x4x16xf32>
    %6 = vector.shape_cast %5 : vector<1x4x4x16xf32> to vector<4x4x16xf32>
    %7 = vector.shape_cast %6 : vector<4x4x16xf32> to vector<16x4x4xf32>
    %8 = tpu.transpose %7, [0, 2, 1] : vector<16x4x4xf32> -> vector<16x4x4xf32>
    %9 = vector.shape_cast %8 : vector<16x4x4xf32> to vector<64x4xf32>
    %10 = tpu.transpose %9, [1, 0] : vector<64x4xf32> -> vector<4x64xf32>
    %c0_2 = arith.constant 0 : index
    %11 = arith.index_cast %3 : i32 to index
    %c0_3 = arith.constant 0 : index
    %12 = vector.load %arg3[%c0_2, %11, %c0_3] : memref<1x25x64xf32, #tpu.memory_space<vmem>>, vector<1x4x64xf32>
    %13 = vector.shape_cast %12 : vector<1x4x64xf32> to vector<4x64xf32>
    %14 = vector.shape_cast %10 : vector<4x64xf32> to vector<1x4x64xf32>
    tpu.vector_store %arg3[%c0_2, %11, %c0_3], %14 {strides = array<i32>} : memref<1x25x64xf32, #tpu.memory_space<vmem>>, vector<1x4x64xf32>,
    %c4_i32_4 = arith.constant 4 : i32
    %15 = arith.addi %3, %c4_i32_4 : i32
    %c0_5 = arith.constant 0 : index
    %16 = arith.index_cast %15 : i32 to index
    %c0_6 = arith.constant 0 : index
    %17 = vector.load %arg3[%c0_5, %16, %c0_6] : memref<1x25x64xf32, #tpu.memory_space<vmem>>, vector<1x1x64xf32>
    %18 = vector.shape_cast %17 : vector<1x1x64xf32> to vector<1x64xf32>
    %19 = vector.shape_cast %0 : vector<1x64xf32> to vector<1x1x64xf32>
    tpu.vector_store %arg3[%c0_5, %16, %c0_6], %19 {strides = array<i32>} : memref<1x25x64xf32, #tpu.memory_space<vmem>>, vector<1x1x64xf32>,
    %c1_i32 = arith.constant 1 : i32
    %c4_i32_7 = arith.constant 4 : i32
    %20 = arith.muli %c1_i32, %c4_i32_7 : i32
    %21 = tpu.assume_multiple %20, 4 : i32
    %c5_i32_8 = arith.constant 5 : i32
    %22 = arith.muli %c1_i32, %c5_i32_8 : i32
    %c0_9 = arith.constant 0 : index
    %c0_10 = arith.constant 0 : index
    %23 = arith.index_cast %21 : i32 to index
    %c0_11 = arith.constant 0 : index
    %24 = vector.load %arg2[%c0_9, %c0_10, %23, %c0_11] : memref<1x4x16x16xf32, #tpu.memory_space<vmem>>, vector<1x4x4x16xf32>
    %25 = vector.shape_cast %24 : vector<1x4x4x16xf32> to vector<4x4x16xf32>
    %26 = vector.shape_cast %25 : vector<4x4x16xf32> to vector<16x4x4xf32>
    %27 = tpu.transpose %26, [0, 2, 1] : vector<16x4x4xf32> -> vector<16x4x4xf32>
    %28 = vector.shape_cast %27 : vector<16x4x4xf32> to vector<64x4xf32>
    %29 = tpu.transpose %28, [1, 0] : vector<64x4xf32> -> vector<4x64xf32>
    %c0_12 = arith.constant 0 : index
    %30 = arith.index_cast %22 : i32 to index
    %c0_13 = arith.constant 0 : index
    %31 = vector.load %arg3[%c0_12, %30, %c0_13] : memref<1x25x64xf32, #tpu.memory_space<vmem>>, vector<1x4x64xf32>
    %32 = vector.shape_cast %31 : vector<1x4x64xf32> to vector<4x64xf32>
    %33 = vector.shape_cast %29 : vector<4x64xf32> to vector<1x4x64xf32>
    tpu.vector_store %arg3[%c0_12, %30, %c0_13], %33 {strides = array<i32>} : memref<1x25x64xf32, #tpu.memory_space<vmem>>, vector<1x4x64xf32>,
    %c4_i32_14 = arith.constant 4 : i32
    %34 = arith.addi %22, %c4_i32_14 : i32
    %c0_15 = arith.constant 0 : index
    %35 = arith.index_cast %34 : i32 to index
    %c0_16 = arith.constant 0 : index
    %36 = vector.load %arg3[%c0_15, %35, %c0_16] : memref<1x25x64xf32, #tpu.memory_space<vmem>>, vector<1x1x64xf32>
    %37 = vector.shape_cast %36 : vector<1x1x64xf32> to vector<1x64xf32>
    %38 = vector.shape_cast %0 : vector<1x64xf32> to vector<1x1x64xf32>
    tpu.vector_store %arg3[%c0_15, %35, %c0_16], %38 {strides = array<i32>} : memref<1x25x64xf32, #tpu.memory_space<vmem>>, vector<1x1x64xf32>,
    %c2_i32 = arith.constant 2 : i32
    %c4_i32_17 = arith.constant 4 : i32
    %39 = arith.muli %c2_i32, %c4_i32_17 : i32
    %40 = tpu.assume_multiple %39, 4 : i32
    %c5_i32_18 = arith.constant 5 : i32
    %41 = arith.muli %c2_i32, %c5_i32_18 : i32
    %c0_19 = arith.constant 0 : index
    %c0_20 = arith.constant 0 : index
    %42 = arith.index_cast %40 : i32 to index
    %c0_21 = arith.constant 0 : index
    %43 = vector.load %arg2[%c0_19, %c0_20, %42, %c0_21] : memref<1x4x16x16xf32, #tpu.memory_space<vmem>>, vector<1x4x4x16xf32>
    %44 = vector.shape_cast %43 : vector<1x4x4x16xf32> to vector<4x4x16xf32>
    %45 = vector.shape_cast %44 : vector<4x4x16xf32> to vector<16x4x4xf32>
    %46 = tpu.transpose %45, [0, 2, 1] : vector<16x4x4xf32> -> vector<16x4x4xf32>
    %47 = vector.shape_cast %46 : vector<16x4x4xf32> to vector<64x4xf32>
    %48 = tpu.transpose %47, [1, 0] : vector<64x4xf32> -> vector<4x64xf32>
    %c0_22 = arith.constant 0 : index
    %49 = arith.index_cast %41 : i32 to index
    %c0_23 = arith.constant 0 : index
    %50 = vector.load %arg3[%c0_22, %49, %c0_23] : memref<1x25x64xf32, #tpu.memory_space<vmem>>, vector<1x4x64xf32>
    %51 = vector.shape_cast %50 : vector<1x4x64xf32> to vector<4x64xf32>
    %52 = vector.shape_cast %48 : vector<4x64xf32> to vector<1x4x64xf32>
    tpu.vector_store %arg3[%c0_22, %49, %c0_23], %52 {strides = array<i32>} : memref<1x25x64xf32, #tpu.memory_space<vmem>>, vector<1x4x64xf32>,
    %c4_i32_24 = arith.constant 4 : i32
    %53 = arith.addi %41, %c4_i32_24 : i32
    %c0_25 = arith.constant 0 : index
    %54 = arith.index_cast %53 : i32 to index
    %c0_26 = arith.constant 0 : index
    %55 = vector.load %arg3[%c0_25, %54, %c0_26] : memref<1x25x64xf32, #tpu.memory_space<vmem>>, vector<1x1x64xf32>
    %56 = vector.shape_cast %55 : vector<1x1x64xf32> to vector<1x64xf32>
    %57 = vector.shape_cast %0 : vector<1x64xf32> to vector<1x1x64xf32>
    tpu.vector_store %arg3[%c0_25, %54, %c0_26], %57 {strides = array<i32>} : memref<1x25x64xf32, #tpu.memory_space<vmem>>, vector<1x1x64xf32>,
    %c3_i32 = arith.constant 3 : i32
    %c4_i32_27 = arith.constant 4 : i32
    %58 = arith.muli %c3_i32, %c4_i32_27 : i32
    %59 = tpu.assume_multiple %58, 4 : i32
    %c5_i32_28 = arith.constant 5 : i32
    %60 = arith.muli %c3_i32, %c5_i32_28 : i32
    %c0_29 = arith.constant 0 : index
    %c0_30 = arith.constant 0 : index
    %61 = arith.index_cast %59 : i32 to index
    %c0_31 = arith.constant 0 : index
    %62 = vector.load %arg2[%c0_29, %c0_30, %61, %c0_31] : memref<1x4x16x16xf32, #tpu.memory_space<vmem>>, vector<1x4x4x16xf32>
    %63 = vector.shape_cast %62 : vector<1x4x4x16xf32> to vector<4x4x16xf32>
    %64 = vector.shape_cast %63 : vector<4x4x16xf32> to vector<16x4x4xf32>
    %65 = tpu.transpose %64, [0, 2, 1] : vector<16x4x4xf32> -> vector<16x4x4xf32>
    %66 = vector.shape_cast %65 : vector<16x4x4xf32> to vector<64x4xf32>
    %67 = tpu.transpose %66, [1, 0] : vector<64x4xf32> -> vector<4x64xf32>
    %c0_32 = arith.constant 0 : index
    %68 = arith.index_cast %60 : i32 to index
    %c0_33 = arith.constant 0 : index
    %69 = vector.load %arg3[%c0_32, %68, %c0_33] : memref<1x25x64xf32, #tpu.memory_space<vmem>>, vector<1x4x64xf32>
    %70 = vector.shape_cast %69 : vector<1x4x64xf32> to vector<4x64xf32>
    %71 = vector.shape_cast %67 : vector<4x64xf32> to vector<1x4x64xf32>
    tpu.vector_store %arg3[%c0_32, %68, %c0_33], %71 {strides = array<i32>} : memref<1x25x64xf32, #tpu.memory_space<vmem>>, vector<1x4x64xf32>,
    %c4_i32_34 = arith.constant 4 : i32
    %72 = arith.addi %60, %c4_i32_34 : i32
    %c0_35 = arith.constant 0 : index
    %73 = arith.index_cast %72 : i32 to index
    %c0_36 = arith.constant 0 : index
    %74 = vector.load %arg3[%c0_35, %73, %c0_36] : memref<1x25x64xf32, #tpu.memory_space<vmem>>, vector<1x1x64xf32>
    %75 = vector.shape_cast %74 : vector<1x1x64xf32> to vector<1x64xf32>
    %76 = vector.shape_cast %0 : vector<1x64xf32> to vector<1x1x64xf32>
    tpu.vector_store %arg3[%c0_35, %73, %c0_36], %76 {strides = array<i32>} : memref<1x25x64xf32, #tpu.memory_space<vmem>>, vector<1x1x64xf32>,
    %c4_i32_37 = arith.constant 4 : i32
    %cst_38 = arith.constant 0.000000e+00 : f32
    %77 = vector.broadcast %cst_38 : f32 to vector<5x64xf32>
    %c0_39 = arith.constant 0 : index
    %c20 = arith.constant 20 : index
    %c0_40 = arith.constant 0 : index
    %78 = vector.load %arg3[%c0_39, %c20, %c0_40] : memref<1x25x64xf32, #tpu.memory_space<vmem>>, vector<1x5x64xf32>
    %79 = vector.shape_cast %78 : vector<1x5x64xf32> to vector<5x64xf32>
    %80 = vector.shape_cast %77 : vector<5x64xf32> to vector<1x5x64xf32>
    tpu.vector_store %arg3[%c0_39, %c20, %c0_40], %80 {strides = array<i32>} : memref<1x25x64xf32, #tpu.memory_space<vmem>>, vector<1x5x64xf32>,
    return
  }
  func.func @transform_0(%arg0: i32, %arg1: i32) -> (i32, i32, i32, i32) {
    %c0_i32 = arith.constant 0 : i32
    %c0_i32_0 = arith.constant 0 : i32
    %c0_i32_1 = arith.constant 0 : i32
    return %arg0, %arg1, %c0_i32, %c0_i32_0 : i32, i32, i32, i32
  }
  func.func @transform_1(%arg0: i32, %arg1: i32) -> (i32, i32, i32) {
    %c0_i32 = arith.constant 0 : i32
    %c0_i32_0 = arith.constant 0 : i32
    return %arg0, %c0_i32, %arg1 : i32, i32, i32
  }
}

</mosaic_0001>

<bundles_post_ra>
// kernel: tpu_custom_call.1
= control target key start
LH: loop header
LB: loop body
LE: loop exit
PB: predicated region body
PF: predicated region fallthrough
CT: control target
= control target key end

     0   :  { %6 = vsyncpa [#allocation3], 0  ;;  %s3971_s0 = inlined_call_operand.hbm [shape: f32[2,4,16,16], index: 0, kind: input, shape index: {}]   ;;  %s3972_s1 = inlined_call_operand.vmem [shape: f32[2,25,64], index: 1, kind: output, shape index: {}]  }
   0x1   :  { %8 = vsyncpa [#allocation3 + $0x1], 0  ;;  %s3483_s6 = smov 0   ;;  %s3485_s7 = smov 0  }
   0x2   :  { %s3487_s8 = smov 0   ;;  %s3489_s9 = smov 0  }
   0x3   :  { %s3491_s10 = smov 0   ;;  %s3493_s11 = smov 0  }
   0x4 LB: > { %s3293_s12 = sadd.s32 4294967295, %s3463_s11   ;;  %s26_s13 = sadd.s32 1, %s3459_s10  ;;  %s3463_s11 = sphi %s3493_s11, %s14_s11   ;;  %s3459_s10 = sphi %s3491_s10, %s3979_s10   ;;  %s3455_s9 = sphi %s3489_s9, %s3978_s9   ;;  %s3451_s8 = sphi %s3487_s8, %s3977_s8   ;;  %s3447_s7 = sphi %s3485_s7, %s3976_s7   ;;  %s3443_s6 = sphi %s3483_s6, %s3975_s6  }
   0x5   : > { %p28_p0 = scmp.ge.s32.totalorder %s26_s13, 2  ;;  %s35_s14 = sadd.s32 1, %s3451_s8 }
   0x6   : > { %p42_p1 = scmp.ne.s32.totalorder %s3451_s8, %s3447_s7  ;;  %p43_p2 = scmp.eq.s32.totalorder %s3463_s11, 0 }
   0x7   : > { %s3981_s13 = smov (%p28_p0, %s26_s13), 0  ;;  %p48_p4 = scmp.ne.s32.totalorder %s3447_s7, %s3443_s6 }
   0x8   : > { %p3519_p3 = por %p43_p2, %p42_p1  ;;  %s30_s16 = ssub.s32 %s3459_s10, %s3981_s13 }
   0x9   : > { %p49_p5 = scmp.eq.s32.totalorder %s3293_s12, 0  ;;  %p33_p6 = scmp.eq.s32.totalorder %s30_s16, 0 }
   0xa   : > { %p3326_p8 = scmp.lt.s32.totalorder %s3463_s11, 2  ;;  %s100_s19 = sand.u32 1, %s3451_s8  }
   0xb   : > { %p3526_p7 = por %p49_p5, %p48_p4  ;;  %s3318_s20 = sshll.u32 %s3459_s10, 6 }
   0xc   : > { %s3532_s18 = scalar_select %p33_p6, %s3451_s8, %s35_s14  }
   0xd   : > { %s3297_s21 = sshll.u32 %s100_s19, 6  ;;  %s112_s24 = scalar_lea.hbm %s3971_s0, %s3318_s20 }
   0xe   : > { %s113_s25 = sshll.u32 %s112_s24, 4  ;;  %s104_s26 = scalar_lea.vmem [#allocation2], %s3297_s21  ;;  %s114_s25 = int_to_ptr.hbm [resolvable:$true] %s113_s25 }
   0xf   : > { %s115_s27 = sshll.u32 %s104_s26, 4  ;;  %p3323_p9 = pnand %p3326_p8, %p3519_p3  ;;  %s116_s27 = int_to_ptr.vmem [resolvable:$true] %s115_s27 }
  0x10   : > { %p3300_p10 = scmp.ge.s32.totalorder %s3463_s11, 1  ;;  %p123_p11 = scmp.lt.s32.totalorder %s3463_s11, 3 }
  0x11   : > { %s101_s28 = scalar_lea.sflag [#allocation3], %s100_s19  ;;  %s3465_s29 = smov 128  }
  0x12   : > { %s3466_s30 = smov 8   ;;  %p124_p12 = pnand %p3300_p10, %p123_p11 }
  0x13   : > { %3325 = dma.hbm_to_vmem [thread:$0]  (!%p3323_p9), %s114_s25, 1024, %s116_s27, %s101_s28, %s3465_s29, %s3465_s29, %s3466_s30  }
  0x14   : > { %127 = sbr.rel (%p124_p12) target bundleno = 1242 (0x4da), region = 24  ;;  %s129_s2 = sand.u32 (!%p124_p12), 1, %s3447_s7  }
  0x15   : > { %s3301_s3 = sshll.u32 (!%p124_p12), %s129_s2, 6  ;;  %s130_s4 = scalar_lea.sflag (!%p124_p12), [#allocation3], %s129_s2 }
  0x16   : > { %s3544_s5 = scalar_lea.vmem (!%p124_p12), [#allocation2], %s3301_s3 }
  0x19   : > { %3438 = dma.done.wait (%p3526_p7), %s130_s4, 1024  }
  0x1a   : > { %3440 = vsyncadd (%p3526_p7), %s130_s4, 4294966272  ;;  %v3551_v0 = vld [vmem:[%s3544_s5 + $0x20] sm:$0xf]  ;;  %s3467_s6 = smov 124   ;;  %s3468_s12 = smov 120   ;;  %vm210_vm0 = vcmask 1047556  }
  0x1b   : > { %v165_v1 = vld [vmem:[%s3544_s5] sm:$0xf]  ;;  %177 = vrot.lane.b32.xlu1 %v3551_v0, %s3467_s6  ;;  %v3559_v2 = vld [vmem:[%s3544_s5 + $0x30] sm:$0xf]  ;;  %s3469_s14 = smov 116   ;;  %p157_p13 = scmp.lt.s32.totalorder %s3455_s9, 1 }
  0x1c   : > { %173 = vrot.lane.b32.xlu0 %v165_v1, %s3467_s6  ;;  %185 = vrot.lane.b32.xlu2 %v165_v1, %s3468_s12  ;;  %v3562_v3 = vld [vmem:[%s3544_s5 + $0x10] sm:$0xf]  ;;  %v3582_v4 = vld [vmem:[%s3544_s5 + $0x4] sm:$0xf]  ;;  %v3470_v16 = vmov 1983009808  }
  0x1d   : > { %v3585_v5 = vld [vmem:[%s3544_s5 + $0x14] sm:$0xf]  ;;  %v3588_v6 = vld [vmem:[%s3544_s5 + $0x24] sm:$0xf]  ;;  %v3606_v8 = vld [vmem:[%s3544_s5 + $0x28] sm:$0xf]  ;;  %v213_v17 = vunpack.c.l.s4 %v3470_v16 }
  0x1e   : > { %v3597_v7 = vld [vmem:[%s3544_s5 + $0x34] sm:$0xf]  ;;  %v3617_v9 = vld [vmem:[%s3544_s5 + $0x18] sm:$0xf]  ;;  %v3622_v10 = vld [vmem:[%s3544_s5 + $0xc] sm:$0xf] }
  0x1f   : > { %v3635_v11 = vld [vmem:[%s3544_s5 + $0x8] sm:$0xf]  ;;  %v3644_v13 = vld [vmem:[%s3544_s5 + $0x38] sm:$0xf]  ;;  %v3651_v19 = vunpack.c.0.s8 %v213_v17  ;;  %v3471_v23 = vmov 1934713408  }
  0x20   : > { %v227_v24 = vunpack.c.l.s4 %v3471_v23  ;;  %s3983_s9 = smov (!%p157_p13, %s3455_s9), 1  ;;  %vm923_vm1 = vcmask 516096   ;;  %vm3199_vm2 = vcmask 520192   ;;  %vm921_vm3 = vcmask 519168  }
  0x21   : > { %s3319_s15 = sshll.u32 %s3983_s9, 5 }
  0x22   : > { %v3658_v30 = vunpack.c.0.s8 %v227_v24  ;;  %s3879_s19 = scalar_lea.vmem %s3972_s1, %s3319_s15 }
  0x23   : > { %179 = vrot.lane.b32.xlu1 %v3559_v2, %s3467_s6 }
  0x24   : > { %175 = vrot.lane.b32.xlu0 %v3562_v3, %s3467_s6  ;;  %187 = vrot.lane.b32.xlu2 %v3562_v3, %s3468_s12 }
  0x2b   : > { %191 = vrot.lane.b32.xlu1 %v3559_v2, %s3468_s12 }
  0x2c   : > { %189 = vrot.lane.b32.xlu0 %v3551_v0, %s3468_s12  ;;  %197 = vrot.lane.b32.xlu2 %v165_v1, %s3469_s14 }
  0x33   : > { %201 = vrot.lane.b32.xlu1 %v3551_v0, %s3469_s14 }
  0x34   : > { %199 = vrot.lane.b32.xlu0 %v3562_v3, %s3469_s14  ;;  %203 = vrot.lane.b32.xlu2 %v3559_v2, %s3469_s14 }
  0x3b   : > { %934 = vrot.lane.b32.xlu1 %v3582_v4, %s3467_s6 }
  0x3c   : > { %938 = vrot.lane.b32.xlu0 %v3588_v6, %s3467_s6  ;;  %936 = vrot.lane.b32.xlu2 %v3585_v5, %s3467_s6 }
  0x43   : > { %940 = vrot.lane.b32.xlu1 %v3597_v7, %s3467_s6 }
  0x44   : > { %950 = vrot.lane.b32.xlu2 %v3588_v6, %s3468_s12  ;;  %1696 = vrot.lane.b32.xlu0 %v3606_v8, %s3467_s6 }
  0x4b   : > { %946 = vrot.lane.b32.xlu1 %v3582_v4, %s3468_s12 }
  0x4c   : > { %958 = vrot.lane.b32.xlu2 %v3582_v4, %s3469_s14  ;;  %2474 = vrot.lane.b32.xlu0 %v3622_v10, %s3469_s14 }
  0x53   : > { %948 = vrot.lane.b32.xlu1 %v3585_v5, %s3468_s12 }
  0x54   : > { %962 = vrot.lane.b32.xlu2 %v3588_v6, %s3469_s14 }
  0x5b   : > { %952 = vrot.lane.b32.xlu1 %v3597_v7, %s3468_s12 }
  0x5c   : > { %1694 = vrot.lane.b32.xlu2 %v3617_v9, %s3467_s6 }
  0x63   : > { %960 = vrot.lane.b32.xlu1 %v3585_v5, %s3469_s14 }
  0x64   : > { %1708 = vrot.lane.b32.xlu2 %v3606_v8, %s3468_s12 }
  0x6b   : > { %964 = vrot.lane.b32.xlu1 %v3597_v7, %s3469_s14 }
  0x6c   : > { %1716 = vrot.lane.b32.xlu2 %v3635_v11, %s3469_s14 }
  0x73   : > { %1692 = vrot.lane.b32.xlu1 %v3635_v11, %s3467_s6 }
  0x74   : > { %1720 = vrot.lane.b32.xlu2 %v3606_v8, %s3469_s14 }
  0x76   : > { %v186_v12 = vpop.permute.xlu2 %185 }
  0x77   : > { %v209_v15 = vrot.slane %v186_v12, 4 }
  0x79   : > { %v211_v18 = vsel %vm210_vm0, %v209_v15, %v165_v1 }
  0x7a   : > { %v215_v22 = vperm.slane %v211_v18, %v3651_v19 }
  0x7b   : > { %1698 = vrot.lane.b32.xlu1 %v3644_v13, %s3467_s6 }
  0x7c   : > { %v224_v27 = vrot.slane %v215_v22, 4 }
  0x7e   : > { %v188_v14 = vpop.permute.xlu2 %187 }
  0x7f   : > { %v238_v42 = vrot.slane %v188_v14, 4 }
  0x81   : > { %v239_v43 = vsel %vm210_vm0, %v238_v42, %v3562_v3 }
  0x82   : > { %v243_v49 = vperm.slane %v239_v43, %v3651_v19 }
  0x83   : > { %1704 = vrot.lane.b32.xlu1 %v3635_v11, %s3468_s12 }
  0x84   : > { %v252_v53 = vrot.slane %v243_v49, 4 }
  0x86   : > { %v198_v20 = vpop.permute.xlu2 %197 }
  0x87   : > { %v216_v21 = vrot.slane %v198_v20, 4 }
  0x8b   : > { %1706 = vrot.lane.b32.xlu1 %v3617_v9, %s3468_s12 }
  0x8d   : > { %v178_v25 = vpop.permute.xlu1 %177 }
  0x8e   : > { %v174_v26 = vpop.permute.xlu0 %173  ;;  %v204_v44 = vpop.permute.xlu2 %203 }
  0x8f   : > { %v217_v28 = vsel %vm210_vm0, %v216_v21, %v174_v26  ;;  %v300_v12 = vrot.slane %v204_v44, 4 }
  0x90   : > { %v221_v29 = vperm.slane %v217_v28, %v3651_v19 }
  0x92   : > { %v222_v31 = vrot.slane %v221_v29, 4  ;;  %v225_v32 = vsel %vm210_vm0, %v221_v29, %v224_v27 }
  0x93   : > { %1710 = vrot.lane.b32.xlu1 %v3644_v13, %s3468_s12  ;;  %v233_v34 = vperm.slane %v225_v32, %v3658_v30 }
  0x94   : > { %v223_v33 = vsel %vm210_vm0, %v222_v31, %v215_v22 }
  0x95   : > { %v3666_v35 = vperm.slane %v223_v33, %v3658_v30  ;;  %v180_v36 = vpop.permute.xlu1 %179  ;;  %v236_v38 = vrot.slane %v233_v34, 4 }
  0x96   : > { %v176_v37 = vpop.permute.xlu0 %175  ;;  %v937_v61 = vpop.permute.xlu2 %936  ;;  %v301_v21 = vsel %vm210_vm0, %v300_v12, %v180_v36 }
  0x97   : > { %322 = vxpose.xlu0.b32.start.end [1/1] (short) (narrow) %v3666_v35, 8  ;;  %v237_v39 = vsel %vm210_vm0, 0.0, %v236_v38  ;;  %v305_v24 = vperm.slane %v301_v21, %v3651_v19 }
  0x99   : > { %v306_v29 = vrot.slane %v305_v24, 4 }
  0x9a   : > { %386 = vxpose.xlu2.b32.start.end [1/1] (short) (narrow) %v233_v34, 8 }
  0x9b   : > { %1718 = vrot.lane.b32.xlu1 %v3617_v9, %s3469_s14 }
  0x9d   : > { %v192_v40 = vpop.permute.xlu1 %191 }
  0x9e   : > { %v190_v41 = vpop.permute.xlu0 %189  ;;  %v294_v16 = vrot.slane %v192_v40, 4 }
  0x9f   : > { %418 = vxpose.xlu0.b32.start.end [1/1] (short) (narrow) %v237_v39, 8  ;;  %v266_v54 = vrot.slane %v190_v41, 4 }
  0xa0   : > { %v295_v22 = vsel %vm210_vm0, %v294_v16, %v3559_v2 }
  0xa1   : > { %v267_v62 = vsel %vm210_vm0, %v266_v54, %v3551_v0  ;;  %v299_v27 = vperm.slane %v295_v22, %v3651_v19  ;;  %v234_v54 = vrot.slane %v3666_v35, 4 }
  0xa2   : > { %v271_v14 = vperm.slane %v267_v62, %v3651_v19 }
  0xa3   : > { %1722 = vrot.lane.b32.xlu1 %v3644_v13, %s3469_s14  ;;  %v307_v2 = vsel %vm210_vm0, %v306_v29, %v299_v27  ;;  %v308_v34 = vrot.slane %v299_v27, 4 }
  0xa4   : > { %v280_v26 = vrot.slane %v271_v14, 4 }
  0xa5   : > { %v202_v45 = vpop.permute.xlu1 %201  ;;  %v309_v39 = vsel %vm210_vm0, %v305_v24, %v308_v34 }
  0xa6   : > { %v200_v46 = vpop.permute.xlu0 %199  ;;  %v272_v47 = vrot.slane %v202_v45, 4  ;;  %v317_v43 = vperm.slane %v309_v39, %v3658_v30 }
  0xa7   : > { %v244_v48 = vrot.slane %v200_v46, 4 }
  0xa8   : > { %v273_v51 = vsel %vm210_vm0, %v272_v47, %v178_v25  ;;  %v3698_v25 = vpop.permute.xlu2 %950  ;;  %v320_v47 = vrot.slane %v317_v43, 4 }
  0xa9   : > { %v245_v50 = vsel %vm210_vm0, %v244_v48, %v176_v37  ;;  %v277_v56 = vperm.slane %v273_v51, %v3651_v19  ;;  %v313_v37 = vperm.slane %v307_v2, %v3658_v30  ;;  %v1026_v24 = vrot.slane %v3698_v25, 4 }
  0xaa   : > { %v249_v52 = vperm.slane %v245_v50, %v3651_v19 }
  0xab   : > { %v278_v63 = vrot.slane %v277_v56, 4  ;;  %v281_v32 = vsel %vm210_vm0, %v277_v56, %v280_v26  ;;  %v318_v42 = vrot.slane %v313_v37, 4 }
  0xac   : > { %v250_v55 = vrot.slane %v249_v52, 4  ;;  %v253_v59 = vsel %vm210_vm0, %v249_v52, %v252_v53  ;;  %v289_v36 = vperm.slane %v281_v32, %v3658_v30  ;;  %v321_v52 = vsel %vm210_vm0, 0.0, %v320_v47 }
  0xad   : > { %v935_v57 = vpop.permute.xlu1 %934  ;;  %v261_v3 = vperm.slane %v253_v59, %v3658_v30  ;;  %v279_v18 = vsel %vm210_vm0, %v278_v63, %v271_v14  ;;  %v319_v46 = vsel %vm210_vm0, 0.0, %v318_v42 }
  0xae   : > { %v251_v58 = vsel %vm210_vm0, %v250_v55, %v243_v49  ;;  %v285_v0 = vperm.slane %v279_v18, %v3658_v30 }
  0xaf   : > { %v257_v60 = vperm.slane %v251_v58, %v3658_v30  ;;  %v264_v17 = vrot.slane %v261_v3, 4 }
  0xb0   : > { %v290_v28 = vrot.slane %v285_v0, 4  ;;  %v959_v38 = vpop.permute.xlu2 %958 }
  0xb1   : > { %450 = vxpose.xlu2.b32.start.end [1/1] (short) (narrow) %v257_v60, 8  ;;  %v262_v1 = vrot.slane %v257_v60, 4  ;;  %v265_v23 = vsel %vm210_vm0, 0.0, %v264_v17  ;;  %v976_v41 = vrot.slane %v959_v38, 4 }
  0xb2   : > { %v291_v33 = vsel %vm210_vm0, 0.0, %v290_v28 }
  0xb3   : > { %v263_v15 = vsel %vm210_vm0, 0.0, %v262_v1  ;;  %v977_v45 = vsel %vm210_vm0, %v976_v41, %v935_v57 }
  0xb4   : > { %482 = vxpose.xlu0.b32.start.end [1/1] (short) (narrow) %v263_v15, 8  ;;  %v981_v49 = vperm.slane %v977_v45, %v3651_v19  ;;  %v292_v15 = vrot.slane %v289_v36, 4 }
  0xb5   : > { %v3690_v20 = vpop.permute.xlu1 %940 }
  0xb6   : > { %v982_v53 = vrot.slane %v981_v49, 4 }
  0xb8   : > { %v963_v17 = vpop.permute.xlu2 %962 }
  0xb9   : > { %514 = vxpose.xlu2.b32.start.end [1/1] (short) (narrow) %v261_v3, 8  ;;  %v1032_v18 = vrot.slane %v963_v17, 4 }
  0xbc   : > { %546 = vxpose.xlu0.b32.start.end [1/1] (short) (narrow) %v265_v23, 8  ;;  %v939_v23 = vpop.permute.xlu0 %938 }
  0xbd   : > { %v947_v31 = vpop.permute.xlu1 %946 }
  0xbe   : > { %v970_v44 = vrot.slane %v947_v31, 4  ;;  %v1027_v31 = vsel %vm210_vm0, %v1026_v24, %v3588_v6 }
  0xbf   : > { %v1031_v25 = vperm.slane %v1027_v31, %v3651_v19 }
  0xc0   : > { %v971_v48 = vsel %vm210_vm0, %v970_v44, %v3582_v4  ;;  %v235_v4 = vsel %vm210_vm0, 0.0, %v234_v54 }
  0xc1   : > { %610 = vxpose.xlu2.b32.start.end [1/1] (short) (narrow) %v291_v33, 8  ;;  %v975_v51 = vperm.slane %v971_v48, %v3651_v19  ;;  %v1695_v33 = vpop.permute.xlu2 %1694  ;;  %v1040_v54 = vrot.slane %v1031_v25, 4 }
  0xc3   : > { %v983_v55 = vsel %vm210_vm0, %v982_v53, %v975_v51  ;;  %v984_v59 = vrot.slane %v975_v51, 4 }
  0xc4   : > { %642 = vxpose.xlu0.b32.start.end [1/1] (short) (narrow) %v289_v36, 8  ;;  %v989_v58 = vperm.slane %v983_v55, %v3658_v30 }
  0xc5   : > { %v949_v40 = vpop.permute.xlu1 %948  ;;  %v985_v1 = vsel %vm210_vm0, %v981_v49, %v984_v59 }
  0xc6   : > { %v998_v62 = vrot.slane %v949_v40, 4  ;;  %v3727_v12 = vperm.slane %v985_v1, %v3658_v30 }
  0xc8   : > { %v999_v35 = vsel %vm210_vm0, %v998_v62, %v3585_v5  ;;  %v293_v5 = vsel %vm210_vm0, 0.0, %v292_v15 }
  0xc9   : > { %706 = vxpose.xlu2.b32.start.end [1/1] (short) (narrow) %v313_v37, 8  ;;  %v994_v37 = vrot.slane %v989_v58, 4 }
  0xcb   : > { %v995_v42 = vsel %vm210_vm0, 0.0, %v994_v37 }
  0xcc   : > { %738 = vxpose.xlu0.b32.start.end [1/1] (short) (narrow) %v319_v46, 8 }
  0xcd   : > { %v3713_v50 = vpop.permute.xlu1 %952 }
  0xce   : > { %v1054_v6 = vrot.slane %v3713_v50, 4 }
  0xd0   : > { %v1055_v47 = vsel %vm210_vm0, %v1054_v6, %v3597_v7 }
  0xd1   : > { %802 = vxpose.xlu2.b32.start.end [1/1] (short) (narrow) %v321_v52, 8  ;;  %v1059_v50 = vperm.slane %v1055_v47, %v3651_v19 }
  0xd3   : > { %v1068_v55 = vrot.slane %v1059_v50, 4 }
  0xd5   : > { %v961_v56 = vpop.permute.xlu1 %960 }
  0xd6   : > { %v1004_v57 = vrot.slane %v961_v56, 4 }
  0xd8   : > { %v1005_v60 = vsel %vm210_vm0, %v1004_v57, %v937_v61  ;;  %354 = vxpose.xlu1.b32.start.end [1/1] (short) (narrow) %v235_v4, 8  ;;  %v1003_v61 = vperm.slane %v999_v35, %v3651_v19 }
  0xd9   : > { %1082 = vxpose.xlu2.b32.start.end [1/1] (short) (narrow) %v989_v58, 8  ;;  %v1009_v63 = vperm.slane %v1005_v60, %v3651_v19 }
  0xda   : > { %v1012_v26 = vrot.slane %v1003_v61, 4 }
  0xdb   : > { %v1010_v14 = vrot.slane %v1009_v63, 4 }
  0xdc   : > { %v1013_v29 = vsel %vm210_vm0, %v1009_v63, %v1012_v26 }
  0xdd   : > { %v965_v3 = vpop.permute.xlu1 %964  ;;  %v1011_v16 = vsel %vm210_vm0, %v1010_v14, %v1003_v61  ;;  %v1021_v34 = vperm.slane %v1013_v29, %v3658_v30 }
  0xde   : > { %v1017_v22 = vperm.slane %v1011_v16, %v3658_v30  ;;  %v1060_v39 = vrot.slane %v965_v3, 4 }
  0xdf   : > { %v1024_v38 = vrot.slane %v1021_v34, 4 }
  0xe0   : > { %578 = vxpose.xlu1.b32.start.end [1/1] (short) (narrow) %v285_v0, 8  ;;  %v1033_v0 = vsel %vm210_vm0, %v1032_v18, %v939_v23  ;;  %v1022_v27 = vrot.slane %v1017_v22, 4  ;;  %v1061_v46 = vsel %vm210_vm0, %v1060_v39, %v3690_v20 }
  0xe1   : > { %1146 = vxpose.xlu2.b32.start.end [1/1] (short) (narrow) %v3727_v12, 8  ;;  %v1037_v28 = vperm.slane %v1033_v0, %v3651_v19  ;;  %v1025_v44 = vsel %vm210_vm0, 0.0, %v1024_v38  ;;  %v1065_v48 = vperm.slane %v1061_v46, %v3651_v19 }
  0xe2   : > { %v1023_v2 = vsel %vm210_vm0, 0.0, %v1022_v27 }
  0xe3   : > { %v1038_v36 = vrot.slane %v1037_v28, 4  ;;  %v1066_v53 = vrot.slane %v1065_v48, 4  ;;  %v1041_v57 = vsel %vm210_vm0, %v1037_v28, %v1040_v54  ;;  %v1069_v7 = vsel %vm210_vm0, %v1065_v48, %v1068_v55 }
  0xe4   : > { %v3766_v60 = vperm.slane %v1041_v57, %v3658_v30  ;;  %v1077_v62 = vperm.slane %v1069_v7, %v3658_v30 }
  0xe5   : > { %v1693_v21 = vpop.permute.xlu1 %1692  ;;  %v1039_v40 = vsel %vm210_vm0, %v1038_v36, %v1031_v25  ;;  %v1067_v56 = vsel %vm210_vm0, %v1066_v53, %v1059_v50  ;;  %v1697_v36 = vpop.permute.xlu0 %1696 }
  0xe6   : > { %v1045_v45 = vperm.slane %v1039_v40, %v3658_v30  ;;  %v3761_v4 = vperm.slane %v1067_v56, %v3658_v30  ;;  %v1052_v3 = vrot.slane %v3766_v60, 4  ;;  %v1080_v35 = vrot.slane %v1077_v62, 4 }
  0xe8   : > { %674 = vxpose.xlu1.b32.start.end [1/1] (short) (narrow) %v293_v5, 8  ;;  %v1050_v49 = vrot.slane %v1045_v45, 4  ;;  %v1053_v16 = vsel %vm210_vm0, 0.0, %v1052_v3  ;;  %v1081_v17 = vsel %vm210_vm0, 0.0, %v1080_v35 }
  0xe9   : > { %1210 = vxpose.xlu2.b32.start.end [1/1] (short) (narrow) %v1017_v22, 8 }
  0xea   : > { %v1051_v52 = vsel %vm210_vm0, 0.0, %v1050_v49 }
  0xed   : > { %v3740_v32 = vpop.permute.xlu1 %1698 }
  0xf0   : > { %770 = vxpose.xlu1.b32.start.end [1/1] (short) (narrow) %v317_v43, 8  ;;  %v1709_v43 = vpop.permute.xlu2 %1708 }
  0xf1   : > { %1242 = vxpose.xlu2.b32.start.end [1/1] (short) (narrow) %v1023_v2, 8 }
  0xf5   : > { %v1705_v41 = vpop.permute.xlu1 %1704 }
  0xf6   : > { %v1728_v63 = vrot.slane %v1705_v41, 4 }
  0xf8   : > { %1114 = vxpose.xlu1.b32.start.end [1/1] (short) (narrow) %v995_v42, 8  ;;  %v1717_v20 = vpop.permute.xlu2 %1716  ;;  %v1729_v14 = vsel %vm210_vm0, %v1728_v63, %v3635_v11 }
  0xf9   : > { %1306 = vxpose.xlu2.b32.start.end [1/1] (short) (narrow) %v1025_v44, 8  ;;  %v1734_v58 = vrot.slane %v1717_v20, 4  ;;  %v1733_v15 = vperm.slane %v1729_v14, %v3651_v19 }
  0xfb   : > { %v1735_v1 = vsel %vm210_vm0, %v1734_v58, %v1693_v21  ;;  %v1742_v0 = vrot.slane %v1733_v15, 4 }
  0xfc   : > { %v1739_v61 = vperm.slane %v1735_v1, %v3651_v19 }
  0xfd   : > { %v1707_v51 = vpop.permute.xlu1 %1706 }
  0xfe   : > { %v1740_v18 = vrot.slane %v1739_v61, 4  ;;  %v1756_v5 = vrot.slane %v1707_v51, 4  ;;  %v1743_v31 = vsel %vm210_vm0, %v1739_v61, %v1742_v0 }
  0xff   : > { %v3787_v37 = vperm.slane %v1743_v31, %v3658_v30 }
 0x100   : > { %1274 = vxpose.xlu1.b32.start.end [1/1] (short) (narrow) %v1021_v34, 8  ;;  %v1741_v21 = vsel %vm210_vm0, %v1740_v18, %v1733_v15  ;;  %v1721_v26 = vpop.permute.xlu2 %1720  ;;  %v1757_v27 = vsel %vm210_vm0, %v1756_v5, %v3617_v9  ;;  %v1784_v34 = vrot.slane %v1709_v43, 4  ;;  %v3826_v18 = vpop.permute.xlu0 %2474 }
 0x101   : > { %1370 = vxpose.xlu2.b32.start.end [1/1] (short) (narrow) %v1051_v52, 8  ;;  %v1747_v24 = vperm.slane %v1741_v21, %v3658_v30  ;;  %v1790_v2 = vrot.slane %v1721_v26, 4  ;;  %v1761_v25 = vperm.slane %v1757_v27, %v3651_v19 }
 0x102   : > { %v1785_v9 = vsel %vm210_vm0, %v1784_v34, %v3606_v8 }
 0x103   : > { %v1752_v29 = vrot.slane %v1747_v24, 4  ;;  %v1791_v39 = vsel %vm210_vm0, %v1790_v2, %v1697_v36  ;;  %v1770_v40 = vrot.slane %v1761_v25, 4  ;;  %v1789_v44 = vperm.slane %v1785_v9, %v3651_v19 }
 0x104   : > { %v1795_v41 = vperm.slane %v1791_v39, %v3651_v19 }
 0x105   : > { %v3763_v59 = vpop.permute.xlu1 %1710  ;;  %v1798_v47 = vrot.slane %v1789_v44, 4 }
 0x106   : > { %v1796_v43 = vrot.slane %v1795_v41, 4  ;;  %v1812_v50 = vrot.slane %v3763_v59, 4 }
 0x107   : > { %v1799_v49 = vsel %vm210_vm0, %v1795_v41, %v1798_v47 }
 0x108   : > { %1338 = vxpose.xlu1.b32.start.end [1/1] (short) (narrow) %v1045_v45, 8  ;;  %v1797_v8 = vsel %vm210_vm0, %v1796_v43, %v1789_v44  ;;  %v3806_v54 = vperm.slane %v1799_v49, %v3658_v30  ;;  %v1813_v20 = vsel %vm210_vm0, %v1812_v50, %v3644_v13  ;;  %v3833_v44 = vld [vmem:[%s3544_s5 + $0x1c] sm:$0xf]  ;;  %v3840_v43 = vld [vmem:[%s3544_s5 + $0x2c] sm:$0xf] }
 0x109   : > { %1466 = vxpose.xlu2.b32.start.end [1/1] (short) (narrow) %v3761_v4, 8  ;;  %v1803_v52 = vperm.slane %v1797_v8, %v3658_v30  ;;  %v1817_v58 = vperm.slane %v1813_v20, %v3651_v19  ;;  %v996_v8 = vrot.slane %v3727_v12, 4  ;;  %v1078_v12 = vrot.slane %v3761_v4, 4 }
 0x10a   : > { %v1810_v57 = vrot.slane %v3806_v54, 4 }
 0x10b   : > { %v1826_v1 = vrot.slane %v1817_v58, 4  ;;  %v1808_v13 = vrot.slane %v1803_v52, 4  ;;  %v997_v49 = vsel %vm210_vm0, 0.0, %v996_v8 }
 0x10c   : > { %v1811_v63 = vsel %vm210_vm0, 0.0, %v1810_v57 }
 0x10d   : > { %v1719_v22 = vpop.permute.xlu1 %1718  ;;  %v1809_v14 = vsel %vm210_vm0, 0.0, %v1808_v13 }
 0x10e   : > { %v1762_v23 = vrot.slane %v1719_v22, 4 }
 0x110   : > { %1434 = vxpose.xlu1.b32.start.end [1/1] (short) (narrow) %v1053_v16, 8  ;;  %v1763_v11 = vsel %vm210_vm0, %v1762_v23, %v1695_v33  ;;  %v1753_v33 = vsel %vm210_vm0, 0.0, %v1752_v29 }
 0x111   : > { %1562 = vxpose.xlu2.b32.start.end [1/1] (short) (narrow) %v1081_v17, 8  ;;  %v1767_v28 = vperm.slane %v1763_v11, %v3651_v19 }
 0x113   : > { %v1768_v38 = vrot.slane %v1767_v28, 4  ;;  %v1771_v6 = vsel %vm210_vm0, %v1767_v28, %v1770_v40 }
 0x114   : > { %v1779_v45 = vperm.slane %v1771_v6, %v3658_v30 }
 0x115   : > { %v1769_v42 = vsel %vm210_vm0, %v1768_v38, %v1761_v25  ;;  %v1723_v51 = vpop.permute.xlu1 %1722 }
 0x116   : > { %v1775_v46 = vperm.slane %v1769_v42, %v3658_v30  ;;  %v1818_v55 = vrot.slane %v1723_v51, 4  ;;  %v1782_v56 = vrot.slane %v1779_v45, 4 }
 0x118   : > { %1530 = vxpose.xlu1.b32.start.end [1/1] (short) (narrow) %v1077_v62, 8  ;;  %v1780_v48 = vrot.slane %v1775_v46, 4  ;;  %v1819_v7 = vsel %vm210_vm0, %v1818_v55, %v3740_v32  ;;  %v1783_v62 = vsel %vm210_vm0, 0.0, %v1782_v56 }
 0x119   : > { %1840 = vxpose.xlu2.b32.start.end [1/1] (short) (narrow) %v1747_v24, 8  ;;  %v1823_v59 = vperm.slane %v1819_v7, %v3651_v19 }
 0x11a   : > { %v1781_v53 = vsel %vm210_vm0, 0.0, %v1780_v48  ;;  %v3847_v48 = vld [vmem:[%s3544_s5 + $0x3c] sm:$0xf] }
 0x11b   : > { %v1827_v3 = vsel %vm210_vm0, %v1823_v59, %v1826_v1  ;;  %v1824_v61 = vrot.slane %v1823_v59, 4 }
 0x11c   : > { %v1835_v35 = vperm.slane %v1827_v3, %v3658_v30 }
 0x11d   : > { %v1825_v32 = vsel %vm210_vm0, %v1824_v61, %v1817_v58 }
 0x11e   : > { %v3822_v15 = vperm.slane %v1825_v32, %v3658_v30  ;;  %v1838_v16 = vrot.slane %v1835_v35, 4 }
 0x120   : > { %1872 = vxpose.xlu1.b32.start.end [1/1] (short) (narrow) %v1753_v33, 8  ;;  %v1839_v17 = vsel %vm210_vm0, 0.0, %v1838_v16 }
 0x121   : > { %1904 = vxpose.xlu2.b32.start.end [1/1] (short) (narrow) %v3787_v37, 8 }
 0x128   : > { %2032 = vxpose.xlu1.b32.start.end [1/1] (short) (narrow) %v1779_v45, 8 }
 0x129   : > { %1968 = vxpose.xlu2.b32.start.end [1/1] (short) (narrow) %v1775_v46, 8 }
 0x130   : > { %2096 = vxpose.xlu1.b32.start.end [1/1] (short) (narrow) %v1803_v52, 8  ;;  %v1079_v52 = vsel %vm210_vm0, 0.0, %v1078_v12 }
 0x131   : > { %2000 = vxpose.xlu2.b32.start.end [1/1] (short) (narrow) %v1781_v53, 8 }
 0x133   : > { %v402_v21 = vpop.trf.xlu2 }
 0x134   : > { %854 = vst [vmem:[#allocation1 + $0x10] ss:$2 sm:$0xff] %v402_v21 }
 0x138   : > { %2192 = vxpose.xlu1.b32.start.end [1/1] (short) (narrow) %v1811_v63, 8 }
 0x139   : > { %2064 = vxpose.xlu2.b32.start.end [1/1] (short) (narrow) %v1783_v62, 8  ;;  %v2492_v62 = vrot.slane %v3826_v18, 4 }
 0x13b   : > { %v338_v22 = vpop.trf.xlu0 }
 0x13c   : > { %850 = vst [vmem:[#allocation1] ss:$2 sm:$0xff] %v338_v22 }
 0x140   : > { %2288 = vxpose.xlu1.b32.start.end [1/1] (short) (narrow) %v1835_v35, 8 }
 0x141   : > { %2128 = vxpose.xlu2.b32.start.end [1/1] (short) (narrow) %v1809_v14, 8 }
 0x143   : > { %v434_v23 = vpop.trf.xlu0 }
 0x144   : > { %856 = vst [vmem:[#allocation1 + $0x11] ss:$2 sm:$0xff] %v434_v23 }
 0x149   : > { %2224 = vxpose.xlu2.b32.start.end [1/1] (short) (narrow) %v3822_v15, 8 }
 0x14a   : > { %v466_v5 = vpop.trf.xlu2 }
 0x14b   : > { %858 = vst [vmem:[#allocation1 + $0x20] ss:$2 sm:$0xff] %v466_v5  ;;  %v866_v28 = vld.sshfl [vmem:[#allocation1 + $0x10] sm:$0xff pattern:$0x75316420] }
 0x151   : > { %2320 = vxpose.xlu2.b32.start.end [1/1] (short) (narrow) %v1839_v17, 8 }
 0x152   : > { %v530_v0 = vpop.trf.xlu2 }
 0x153   : > { %862 = vst [vmem:[#allocation1 + $0x30] ss:$2 sm:$0xff] %v530_v0 }
 0x158   : > { %v498_v24 = vpop.trf.xlu0 }
 0x159   : > { %860 = vst [vmem:[#allocation1 + $0x21] ss:$2 sm:$0xff] %v498_v24 }
 0x15a   : > { %v626_v27 = vpop.trf.xlu2 }
 0x160   : > { %v562_v11 = vpop.trf.xlu0  ;;  %v867_v25 = vld.sshfl [vmem:[#allocation1 + $0x20] sm:$0xff pattern:$0x75316420] }
 0x161   : > { %864 = vst [vmem:[#allocation1 + $0x31] ss:$2 sm:$0xff] %v562_v11 }
 0x162   : > { %v722_v34 = vpop.trf.xlu2 }
 0x163   : > { %873 = vst [vmem:[#allocation1 + $0x20] ss:$2 sm:$0xff] %v722_v34 }
 0x168   : > { %v658_v29 = vpop.trf.xlu0  ;;  %v868_v38 = vld.sshfl [vmem:[#allocation1 + $0x30] sm:$0xff pattern:$0x75316420] }
 0x169   : > { %871 = vst [vmem:[#allocation1 + $0x10] ss:$2 sm:$0xff] %v658_v29 }
 0x16a   : > { %v818_v39 = vpop.trf.xlu2 }
 0x16b   : > { %876 = vst [vmem:[#allocation1 + $0x31] ss:$2 sm:$0xff] %v818_v39 }
 0x170   : > { %v754_v36 = vpop.trf.xlu0 }
 0x171   : > { %874 = vst [vmem:[#allocation1 + $0x21] ss:$2 sm:$0xff] %v754_v36 }
 0x172   : > { %v1098_v4 = vpop.trf.xlu2 }
 0x178   : > { %v879_v46 = vld.sshfl [vmem:[#allocation1 + $0x20] sm:$0xff pattern:$0x75316420] }
 0x17a   : > { %v1162_v59 = vpop.trf.xlu2 }
 0x17c   : > { %v370_v26 = vpop.trf.xlu1 }
 0x17d   : > { %852 = vst [vmem:[#allocation1 + $0x1] ss:$2 sm:$0xff] %v370_v26 }
 0x182   : > { %v1226_v35 = vpop.trf.xlu2 }
 0x183   : > { %1618 = vst [vmem:[#allocation1 + $0x20] ss:$2 sm:$0xff] %v1226_v35 }
 0x184   : > { %v865_v31 = vld.sshfl [vmem:[#allocation1] sm:$0xff pattern:$0x75316420]  ;;  %v594_v2 = vpop.trf.xlu1 }
 0x185   : > { %889 = vxpose.xlu0.b32.start [1/8] (short) (narrow) %v865_v31, 8  ;;  %869 = vst [vmem:[#allocation1] ss:$2 sm:$0xff] %v594_v2 }
 0x186   : > { %870 = vst [vmem:[#allocation1 + $0x1] ss:$2 sm:$0xff] %v626_v27 }
 0x18a   : > { %v1258_v21 = vpop.trf.xlu2 }
 0x18b   : > { %1620 = vst [vmem:[#allocation1 + $0x21] ss:$2 sm:$0xff] %v1258_v21 }
 0x18c   : > { %v690_v33 = vpop.trf.xlu1 }
 0x18d   : > { %890 = vxpose.xlu0.b32.cont [2/8] (short) (narrow) %v866_v28, 8  ;;  %872 = vst [vmem:[#allocation1 + $0x11] ss:$2 sm:$0xff] %v690_v33  ;;  %v877_v40 = vld.sshfl [vmem:[#allocation1] sm:$0xff pattern:$0x75316420] }
 0x18e   : > { %1610 = vst [vmem:[#allocation1] ss:$2 sm:$0xff] %v1098_v4 }
 0x192   : > { %v1322_v0 = vpop.trf.xlu2  ;;  %v1627_v29 = vld.sshfl [vmem:[#allocation1 + $0x20] sm:$0xff pattern:$0x75316420] }
 0x194   : > { %v786_v9 = vpop.trf.xlu1  ;;  %v878_v45 = vld.sshfl [vmem:[#allocation1 + $0x10] sm:$0xff pattern:$0x75316420] }
 0x195   : > { %891 = vxpose.xlu0.b32.cont [3/8] (short) (narrow) %v867_v25, 8  ;;  %875 = vst [vmem:[#allocation1 + $0x30] ss:$2 sm:$0xff] %v786_v9 }
 0x196   : > { %1614 = vst [vmem:[#allocation1 + $0x10] ss:$2 sm:$0xff] %v1162_v59 }
 0x19a   : > { %2450 = vrot.lane.b32.xlu1 %v3622_v10, %s3467_s6  ;;  %v1386_v11 = vpop.trf.xlu2 }
 0x19c   : > { %v1130_v41 = vpop.trf.xlu1  ;;  %v880_v6 = vld.sshfl [vmem:[#allocation1 + $0x30] sm:$0xff pattern:$0x75316420] }
 0x19d   : > { %892 = vxpose.xlu0.b32.cont [4/8] (short) (narrow) %v868_v38, 8  ;;  %1612 = vst [vmem:[#allocation1 + $0x1] ss:$2 sm:$0xff] %v1130_v41  ;;  %v1754_v41 = vrot.slane %v3787_v37, 4 }
 0x19e   : > { %1624 = vst [vmem:[#allocation1 + $0x31] ss:$2 sm:$0xff] %v1322_v0 }
 0x1a2   : > { %2462 = vrot.lane.b32.xlu1 %v3622_v10, %s3468_s12  ;;  %v1482_v31 = vpop.trf.xlu2 }
 0x1a3   : > { %1633 = vst [vmem:[#allocation1 + $0x20] ss:$2 sm:$0xff] %v1482_v31 }
 0x1a4   : > { %v1290_v42 = vpop.trf.xlu1  ;;  %v1625_v58 = vld.sshfl [vmem:[#allocation1] sm:$0xff pattern:$0x75316420] }
 0x1a5   : > { %893 = vxpose.xlu0.b32.cont [5/8] (short) (narrow) %v877_v40, 8  ;;  %1622 = vst [vmem:[#allocation1 + $0x30] ss:$2 sm:$0xff] %v1290_v42 }
 0x1a6   : > { %1630 = vst [vmem:[#allocation1 + $0x1] ss:$2 sm:$0xff] %v1386_v11 }
 0x1aa   : > { %2476 = vrot.lane.b32.xlu1 %v3833_v44, %s3469_s14  ;;  %v1578_v25 = vpop.trf.xlu2 }
 0x1ac   : > { %v1354_v47 = vpop.trf.xlu1  ;;  %v1628_v26 = vld.sshfl [vmem:[#allocation1 + $0x30] sm:$0xff pattern:$0x75316420] }
 0x1ad   : > { %894 = vxpose.xlu0.b32.cont [6/8] (short) (narrow) %v878_v45, 8  ;;  %1629 = vst [vmem:[#allocation1] ss:$2 sm:$0xff] %v1354_v47  ;;  %v1836_v45 = vrot.slane %v3822_v15, 4 }
 0x1ae   : > { %1636 = vst [vmem:[#allocation1 + $0x31] ss:$2 sm:$0xff] %v1578_v25 }
 0x1b2   : > { %2464 = vrot.lane.b32.xlu1 %v3833_v44, %s3468_s12  ;;  %v1856_v9 = vpop.trf.xlu2 }
 0x1b4   : > { %v3855_v51 = vpop.trf.xlu1  ;;  %v1637_v27 = vld.sshfl [vmem:[#allocation1] sm:$0xff pattern:$0x75316420] }
 0x1b5   : > { %895 = vxpose.xlu0.b32.cont [7/8] (short) (narrow) %v879_v46, 8  ;;  %2368 = vst [vmem:[#allocation1] ss:$2 sm:$0xff] %v1856_v9  ;;  %v1837_v46 = vsel %vm210_vm0, 0.0, %v1836_v45 }
 0x1ba   : > { %2452 = vrot.lane.b32.xlu2 %v3833_v44, %s3467_s6  ;;  %2454 = vrot.lane.b32.xlu1 %v3840_v43, %s3467_s6  ;;  %v1920_v40 = vpop.trf.xlu2 }
 0x1bc   : > { %v1546_v50 = vpop.trf.xlu1 }
 0x1bd   : > { %896 = vxpose.xlu0.b32.end [8/8] (short) (narrow) %v880_v6, 8  ;;  %1635 = vst [vmem:[#allocation1 + $0x30] ss:$2 sm:$0xff] %v1546_v50  ;;  %v1755_v6 = vsel %vm210_vm0, 0.0, %v1754_v41 }
 0x1c2   : > { %2478 = vrot.lane.b32.xlu2 %v3840_v43, %s3469_s14  ;;  %2480 = vrot.lane.b32.xlu1 %v3847_v48, %s3469_s14  ;;  %v1984_v42 = vpop.trf.xlu2 }
 0x1c4   : > { %v1888_v53 = vpop.trf.xlu1  ;;  %v1640_v33 = vld.sshfl [vmem:[#allocation1 + $0x30] sm:$0xff pattern:$0x75316420] }
 0x1c5   : > { %1178 = vxpose.xlu0.b32.start.end [1/1] (short) (narrow) %v997_v49, 8  ;;  %2370 = vst [vmem:[#allocation1 + $0x1] ss:$2 sm:$0xff] %v1888_v53 }
 0x1ca   : > { %2466 = vrot.lane.b32.xlu2 %v3840_v43, %s3468_s12  ;;  %2468 = vrot.lane.b32.xlu1 %v3847_v48, %s3468_s12  ;;  %v2016_v8 = vpop.trf.xlu2 }
 0x1cc   : > { %v3866_v55 = vpop.trf.xlu1  ;;  %v2383_v47 = vld.sshfl [vmem:[#allocation1] sm:$0xff pattern:$0x75316420] }
 0x1cd   : > { %1402 = vxpose.xlu0.b32.start.end [1/1] (short) (narrow) %v3766_v60, 8  ;;  %v3472_v60 = vmov 0.0   ;;  %2380 = vst [vmem:[#allocation1 + $0x30] ss:$2 sm:$0xff] %v3866_v55 }
 0x1ce   : > { %924 = vst.msk [vmem:[%s3879_s19 + $0x4] sm:$0x1] %vm923_vm1, %v3472_v60 }
 0x1cf   : > { %1682 = vst.msk [vmem:[%s3879_s19 + $0x9] sm:$0x1] %vm923_vm1, %v3472_v60 }
 0x1d0   : > { %2440 = vst.msk [vmem:[%s3879_s19 + $0xe] sm:$0x1] %vm923_vm1, %v3472_v60 }
 0x1d1   : > { %3198 = vst.msk [vmem:[%s3879_s19 + $0x13] sm:$0x1] %vm923_vm1, %v3472_v60 }
 0x1d2   : > { %2456 = vrot.lane.b32.xlu2 %v3847_v48, %s3467_s6  ;;  %3200 = vst.msk [vmem:[%s3879_s19 + $0x14] sm:$0x1f] %vm3199_vm2, %v3472_v60  ;;  %v2080_v37 = vpop.trf.xlu2 }
 0x1d3   : > { %2382 = vst [vmem:[#allocation1 + $0x31] ss:$2 sm:$0xff] %v2080_v37 }
 0x1d4   : > { %v3868_v20 = vpop.trf.xlu1 }
 0x1d5   : > { %1498 = vxpose.xlu0.b32.start.end [1/1] (short) (narrow) %v1079_v52, 8  ;;  %2387 = vst [vmem:[#allocation1] ss:$2 sm:$0xff] %v3868_v20 }
 0x1da   : > { %v2386_v12 = vld.sshfl [vmem:[#allocation1 + $0x30] sm:$0xff pattern:$0x75316420] }
 0x1dc   : > { %v3870_v56 = vpop.trf.xlu1 }
 0x1dd   : > { %1649 = vxpose.xlu0.b32.start [1/8] (short) (narrow) %v1625_v58, 8 }
 0x1e4   : > { %v3874_v57 = vpop.trf.xlu1 }
 0x1e5   : > { %2393 = vst [vmem:[#allocation1 + $0x30] ss:$2 sm:$0xff] %v3874_v57 }
 0x20c   : > { %v2451_v7 = vpop.permute.xlu1 %2450 }
 0x20d   : > { %v2493_v63 = vsel %vm210_vm0, %v2492_v62, %v2451_v7 }
 0x20e   : > { %v2497_v1 = vperm.slane %v2493_v63, %v3651_v19 }
 0x210   : > { %v2498_v61 = vrot.slane %v2497_v1, 4 }
 0x214   : > { %v2463_v3 = vpop.permute.xlu1 %2462 }
 0x215   : > { %v2486_v13 = vrot.slane %v2463_v3, 4 }
 0x217   : > { %v2487_v14 = vsel %vm210_vm0, %v2486_v13, %v3622_v10 }
 0x218   : > { %v2491_v32 = vperm.slane %v2487_v14, %v3651_v19 }
 0x21a   : > { %v2499_v16 = vsel %vm210_vm0, %v2498_v61, %v2491_v32  ;;  %v2500_v18 = vrot.slane %v2491_v32, 4 }
 0x21b   : > { %v2505_v17 = vperm.slane %v2499_v16, %v3658_v30 }
 0x21c   : > { %v2501_v5 = vsel %vm210_vm0, %v2497_v1, %v2500_v18  ;;  %v2477_v53 = vpop.permute.xlu1 %2476 }
 0x21d   : > { %2598 = vxpose.xlu2.b32.start.end [1/1] (short) (narrow) %v2505_v17, 8  ;;  %v2510_v22 = vrot.slane %v2505_v17, 4  ;;  %v3897_v10 = vperm.slane %v2501_v5, %v3658_v30  ;;  %v2520_v55 = vrot.slane %v2477_v53, 4 }
 0x21f   : > { %v2511_v23 = vsel %vm210_vm0, 0.0, %v2510_v22 }
 0x220   : > { %2630 = vxpose.xlu1.b32.start.end [1/1] (short) (narrow) %v2511_v23, 8 }
 0x224   : > { %v2465_v60 = vpop.permute.xlu1 %2464 }
 0x225   : > { %2662 = vxpose.xlu2.b32.start.end [1/1] (short) (narrow) %v3897_v10, 8  ;;  %v2514_v58 = vrot.slane %v2465_v60, 4 }
 0x227   : > { %v2515_v62 = vsel %vm210_vm0, %v2514_v58, %v3833_v44 }
 0x228   : > { %v2519_v63 = vperm.slane %v2515_v62, %v3651_v19 }
 0x229   : > { %v905_v24 = vpop.trf.xlu0 }
 0x22a   : > { %922 = vst.msk [vmem:[%s3879_s19] sm:$0xf] %vm921_vm3, %v905_v24  ;;  %v2528_v22 = vrot.slane %v2519_v63, 4 }
 0x22c   : > { %v2455_v61 = vpop.permute.xlu1 %2454 }
 0x234   : > { %v2481_v23 = vpop.permute.xlu1 %2480 }
 0x269   : > { %v1194_v28 = vpop.trf.xlu0 }
 0x26a   : > { %1616 = vst [vmem:[#allocation1 + $0x11] ss:$2 sm:$0xff] %v1194_v28 }
 0x271   : > { %v1626_v2 = vld.sshfl [vmem:[#allocation1 + $0x10] sm:$0xff pattern:$0x75316420]  ;;  %v1418_v34 = vpop.trf.xlu0 }
 0x272   : > { %1632 = vst [vmem:[#allocation1 + $0x11] ss:$2 sm:$0xff] %v3855_v51  ;;  %1650 = vxpose.xlu0.b32.cont [2/8] (short) (narrow) %v1626_v2, 8  ;;  %v2144_v51 = vpop.trf.xlu2 }
 0x273   : > { %1631 = vst [vmem:[#allocation1 + $0x10] ss:$2 sm:$0xff] %v1418_v34 }
 0x274   : > { %2388 = vst [vmem:[#allocation1 + $0x1] ss:$2 sm:$0xff] %v2144_v51 }
 0x279   : > { %v1514_v36 = vpop.trf.xlu0 }
 0x27a   : > { %1651 = vxpose.xlu0.b32.cont [3/8] (short) (narrow) %v1627_v29, 8  ;;  %1634 = vst [vmem:[#allocation1 + $0x21] ss:$2 sm:$0xff] %v1514_v36  ;;  %v1638_v38 = vld.sshfl [vmem:[#allocation1 + $0x10] sm:$0xff pattern:$0x75316420]  ;;  %v2240_v15 = vpop.trf.xlu2 }
 0x27b   : > { %2372 = vst [vmem:[#allocation1 + $0x10] ss:$2 sm:$0xff] %v1920_v40  ;;  %v2395_v18 = vld.sshfl [vmem:[#allocation1] sm:$0xff pattern:$0x75316420]  ;;  %v2576_v29 = vrot.slane %v2481_v23, 4 }
 0x281   : > { %v1639_v39 = vld.sshfl [vmem:[#allocation1 + $0x20] sm:$0xff pattern:$0x75316420] }
 0x282   : > { %1652 = vxpose.xlu0.b32.cont [4/8] (short) (narrow) %v1628_v26, 8  ;;  %2376 = vst [vmem:[#allocation1 + $0x20] ss:$2 sm:$0xff] %v1984_v42  ;;  %v2336_v50 = vpop.trf.xlu2 }
 0x283   : > { %2378 = vst [vmem:[#allocation1 + $0x21] ss:$2 sm:$0xff] %v2016_v8 }
 0x284   : > { %2394 = vst [vmem:[#allocation1 + $0x31] ss:$2 sm:$0xff] %v2336_v50 }
 0x28a   : > { %1653 = vxpose.xlu0.b32.cont [5/8] (short) (narrow) %v1637_v27, 8  ;;  %v2453_v7 = vpop.permute.xlu2 %2452 }
 0x28b   : > { %v2521_v57 = vsel %vm210_vm0, %v2520_v55, %v2453_v7 }
 0x28c   : > { %v2525_v59 = vperm.slane %v2521_v57, %v3651_v19 }
 0x28e   : > { %v2526_v1 = vrot.slane %v2525_v59, 4  ;;  %v2529_v24 = vsel %vm210_vm0, %v2525_v59, %v2528_v22 }
 0x28f   : > { %v2537_v11 = vperm.slane %v2529_v24, %v3658_v30 }
 0x290   : > { %v2527_v13 = vsel %vm210_vm0, %v2526_v1, %v2519_v63 }
 0x291   : > { %2790 = vxpose.xlu1.b32.start.end [1/1] (short) (narrow) %v2537_v11, 8  ;;  %v2540_v28 = vrot.slane %v2537_v11, 4 }
 0x292   : > { %1654 = vxpose.xlu0.b32.cont [6/8] (short) (narrow) %v1638_v38, 8  ;;  %v2479_v35 = vpop.permute.xlu2 %2478 }
 0x293   : > { %v2548_v32 = vrot.slane %v2479_v35, 4  ;;  %v2541_v31 = vsel %vm210_vm0, 0.0, %v2540_v28 }
 0x295   : > { %v2549_v44 = vsel %vm210_vm0, %v2548_v32, %v2455_v61 }
 0x296   : > { %v2553_v17 = vperm.slane %v2549_v44, %v3651_v19 }
 0x298   : > { %v2554_v0 = vrot.slane %v2553_v17, 4 }
 0x29a   : > { %1655 = vxpose.xlu0.b32.cont [7/8] (short) (narrow) %v1639_v39, 8  ;;  %v2467_v21 = vpop.permute.xlu2 %2466 }
 0x29b   : > { %v2542_v5 = vrot.slane %v2467_v21, 4 }
 0x29d   : > { %v2543_v26 = vsel %vm210_vm0, %v2542_v5, %v3840_v43 }
 0x29e   : > { %v2547_v27 = vperm.slane %v2543_v26, %v3651_v19 }
 0x2a0   : > { %v2555_v2 = vsel %vm210_vm0, %v2554_v0, %v2547_v27  ;;  %v2556_v34 = vrot.slane %v2547_v27, 4 }
 0x2a1   : > { %v2561_v36 = vperm.slane %v2555_v2, %v3658_v30 }
 0x2a2   : > { %1656 = vxpose.xlu0.b32.end [8/8] (short) (narrow) %v1640_v33, 8  ;;  %v2469_v33 = vpop.permute.xlu1 %2468  ;;  %v2457_v38 = vpop.permute.xlu2 %2456  ;;  %v2557_v39 = vsel %vm210_vm0, %v2553_v17, %v2556_v34 }
 0x2a3   : > { %v2570_v43 = vrot.slane %v2469_v33, 4  ;;  %v2577_v9 = vsel %vm210_vm0, %v2576_v29, %v2457_v38  ;;  %v2566_v40 = vrot.slane %v2561_v36, 4  ;;  %v2565_v41 = vperm.slane %v2557_v39, %v3658_v30  ;;  %2854 = vxpose.xlu1.b32.start.end [1/1] (short) (narrow) %v2561_v36, 8 }
 0x2a5   : > { %v2571_v42 = vsel %vm210_vm0, %v2570_v43, %v3847_v48 }
 0x2a6   : > { %v2575_v45 = vperm.slane %v2571_v42, %v3651_v19 }
 0x2a8   : > { %v2584_v37 = vrot.slane %v2575_v45, 4 }
 0x2aa   : > { %1936 = vxpose.xlu0.b32.start.end [1/1] (short) (narrow) %v1755_v6, 8  ;;  %v2581_v6 = vperm.slane %v2577_v9, %v3651_v19 }
 0x2ac   : > { %v2585_v50 = vsel %vm210_vm0, %v2581_v6, %v2584_v37 }
 0x2ad   : > { %v2593_v48 = vperm.slane %v2585_v50, %v3658_v30 }
 0x2af   : > { %v2596_v53 = vrot.slane %v2593_v48, 4 }
 0x2b2   : > { %2160 = vxpose.xlu0.b32.start.end [1/1] (short) (narrow) %v3806_v54, 8  ;;  %v2385_v54 = vld.sshfl [vmem:[#allocation1 + $0x20] sm:$0xff pattern:$0x75316420] }
 0x2b3   : > { %2391 = vst [vmem:[#allocation1 + $0x20] ss:$2 sm:$0xff] %v2240_v15 }
 0x2ba   : > { %2256 = vxpose.xlu0.b32.start.end [1/1] (short) (narrow) %v1837_v46, 8  ;;  %v2582_v46 = vrot.slane %v2581_v6, 4 }
 0x2bc   : > { %v2583_v51 = vsel %vm210_vm0, %v2582_v46, %v2575_v45 }
 0x2bd   : > { %v2589_v19 = vperm.slane %v2583_v51, %v3658_v30 }
 0x2bf   : > { %v2594_v7 = vrot.slane %v2589_v19, 4 }
 0x2c2   : > { %2407 = vxpose.xlu0.b32.start [1/8] (short) (narrow) %v2383_v47, 8  ;;  %v2567_v47 = vsel %vm210_vm0, 0.0, %v2566_v40 }
 0x30e   : > { %v1665_v49 = vpop.trf.xlu0 }
 0x30f   : > { %1681 = vst.msk [vmem:[%s3879_s19 + $0x5] sm:$0xf] %vm921_vm3, %v1665_v49  ;;  %v2568_v49 = vrot.slane %v2565_v41, 4 }
 0x311   : > { %v2569_v15 = vsel %vm210_vm0, 0.0, %v2568_v49 }
 0x312   : > { %2950 = vxpose.xlu1.b32.start.end [1/1] (short) (narrow) %v2569_v15, 8 }
 0x31a   : > { %3046 = vxpose.xlu1.b32.start.end [1/1] (short) (narrow) %v2593_v48, 8 }
 0x34e   : > { %v1952_v52 = vpop.trf.xlu0 }
 0x34f   : > { %2374 = vst [vmem:[#allocation1 + $0x11] ss:$2 sm:$0xff] %v1952_v52  ;;  %v2398_v52 = vld.sshfl [vmem:[#allocation1 + $0x30] sm:$0xff pattern:$0x75316420] }
 0x356   : > { %v2384_v20 = vld.sshfl [vmem:[#allocation1 + $0x10] sm:$0xff pattern:$0x75316420]  ;;  %v2176_v4 = vpop.trf.xlu0 }
 0x357   : > { %2408 = vxpose.xlu0.b32.cont [2/8] (short) (narrow) %v2384_v20, 8  ;;  %2390 = vst [vmem:[#allocation1 + $0x11] ss:$2 sm:$0xff] %v3870_v56  ;;  %v2533_v56 = vperm.slane %v2527_v13, %v3658_v30  ;;  %v2512_v20 = vrot.slane %v3897_v10, 4  ;;  %v2595_v30 = vsel %vm210_vm0, 0.0, %v2594_v7 }
 0x358   : > { %2389 = vst [vmem:[#allocation1 + $0x10] ss:$2 sm:$0xff] %v2176_v4  ;;  %v2597_v4 = vsel %vm210_vm0, 0.0, %v2596_v53 }
 0x359   : > { %2726 = vxpose.xlu2.b32.start.end [1/1] (short) (narrow) %v2533_v56, 8  ;;  %v2538_v14 = vrot.slane %v2533_v56, 4  ;;  %v2513_v60 = vsel %vm210_vm0, 0.0, %v2512_v20 }
 0x35b   : > { %v2539_v16 = vsel %vm210_vm0, 0.0, %v2538_v14 }
 0x35e   : > { %v2272_v3 = vpop.trf.xlu0 }
 0x35f   : > { %2409 = vxpose.xlu0.b32.cont [3/8] (short) (narrow) %v2385_v54, 8  ;;  %2392 = vst [vmem:[#allocation1 + $0x21] ss:$2 sm:$0xff] %v2272_v3  ;;  %v2396_v25 = vld.sshfl [vmem:[#allocation1 + $0x10] sm:$0xff pattern:$0x75316420]  ;;  %v2646_v54 = vpop.trf.xlu1 }
 0x360   : > { %3128 = vst [vmem:[#allocation1 + $0x1] ss:$2 sm:$0xff] %v2646_v54 }
 0x361   : > { %2758 = vxpose.xlu2.b32.start.end [1/1] (short) (narrow) %v2539_v16, 8 }
 0x366   : > { %v2397_v8 = vld.sshfl [vmem:[#allocation1 + $0x20] sm:$0xff pattern:$0x75316420] }
 0x367   : > { %2410 = vxpose.xlu0.b32.cont [4/8] (short) (narrow) %v2386_v12, 8  ;;  %v2614_v12 = vpop.trf.xlu2  ;;  %v2806_v63 = vpop.trf.xlu1 }
 0x368   : > { %3126 = vst [vmem:[#allocation1] ss:$2 sm:$0xff] %v2614_v12 }
 0x369   : > { %2822 = vxpose.xlu2.b32.start.end [1/1] (short) (narrow) %v2541_v31, 8  ;;  %3138 = vst [vmem:[#allocation1 + $0x30] ss:$2 sm:$0xff] %v2806_v63 }
 0x36f   : > { %2411 = vxpose.xlu0.b32.cont [5/8] (short) (narrow) %v2395_v18, 8  ;;  %v2678_v55 = vpop.trf.xlu2  ;;  %v3141_v58 = vld.sshfl [vmem:[#allocation1] sm:$0xff pattern:$0x75316420]  ;;  %v2870_v3 = vpop.trf.xlu1 }
 0x370   : > { %3130 = vst [vmem:[#allocation1 + $0x10] ss:$2 sm:$0xff] %v2678_v55 }
 0x371   : > { %2886 = vxpose.xlu2.b32.start.end [1/1] (short) (narrow) %v2567_v47, 8  ;;  %3145 = vst [vmem:[#allocation1] ss:$2 sm:$0xff] %v2870_v3 }
 0x377   : > { %2412 = vxpose.xlu0.b32.cont [6/8] (short) (narrow) %v2396_v25, 8 }
 0x379   : > { %2982 = vxpose.xlu2.b32.start.end [1/1] (short) (narrow) %v2589_v19, 8 }
 0x37f   : > { %2413 = vxpose.xlu0.b32.cont [7/8] (short) (narrow) %v2397_v8, 8 }
 0x381   : > { %3078 = vxpose.xlu2.b32.start.end [1/1] (short) (narrow) %v2597_v4, 8 }
 0x387   : > { %2414 = vxpose.xlu0.b32.end [8/8] (short) (narrow) %v2398_v52, 8 }
 0x38f   : > { %2694 = vxpose.xlu0.b32.start.end [1/1] (short) (narrow) %v2513_v60, 8 }
 0x397   : > { %2918 = vxpose.xlu0.b32.start.end [1/1] (short) (narrow) %v2565_v41, 8 }
 0x39f   : > { %3014 = vxpose.xlu0.b32.start.end [1/1] (short) (narrow) %v2595_v30, 8 }
 0x3a7   : > { %3165 = vxpose.xlu0.b32.start [1/8] (short) (narrow) %v3141_v58, 8 }
 0x3b6   : > { %v2966_v35 = vpop.trf.xlu1 }
 0x3be   : > { %v3062_v44 = vpop.trf.xlu1 }
 0x3f2   : > { %v2742_v59 = vpop.trf.xlu2 }
 0x3f3   : > { %v2423_v57 = vpop.trf.xlu0  ;;  %3134 = vst [vmem:[#allocation1 + $0x20] ss:$2 sm:$0xff] %v2742_v59 }
 0x3f4   : > { %2439 = vst.msk [vmem:[%s3879_s19 + $0xa] sm:$0xf] %vm921_vm3, %v2423_v57 }
 0x3fa   : > { %v2774_v10 = vpop.trf.xlu2 }
 0x3fb   : > { %3136 = vst [vmem:[#allocation1 + $0x21] ss:$2 sm:$0xff] %v2774_v10 }
 0x402   : > { %v2838_v62 = vpop.trf.xlu2  ;;  %v3143_v56 = vld.sshfl [vmem:[#allocation1 + $0x20] sm:$0xff pattern:$0x75316420] }
 0x403   : > { %3140 = vst [vmem:[#allocation1 + $0x31] ss:$2 sm:$0xff] %v2838_v62 }
 0x40a   : > { %v2902_v1 = vpop.trf.xlu2  ;;  %v3144_v17 = vld.sshfl [vmem:[#allocation1 + $0x30] sm:$0xff pattern:$0x75316420] }
 0x40b   : > { %3146 = vst [vmem:[#allocation1 + $0x1] ss:$2 sm:$0xff] %v2902_v1 }
 0x40c   : > { %3151 = vst [vmem:[#allocation1 + $0x30] ss:$2 sm:$0xff] %v3062_v44 }
 0x412   : > { %v2998_v14 = vpop.trf.xlu2  ;;  %v3153_v22 = vld.sshfl [vmem:[#allocation1] sm:$0xff pattern:$0x75316420] }
 0x413   : > { %3149 = vst [vmem:[#allocation1 + $0x20] ss:$2 sm:$0xff] %v2998_v14 }
 0x41a   : > { %v3094_v16 = vpop.trf.xlu2 }
 0x41b   : > { %3152 = vst [vmem:[#allocation1 + $0x31] ss:$2 sm:$0xff] %v3094_v16 }
 0x422   : > { %v3156_v5 = vld.sshfl [vmem:[#allocation1 + $0x30] sm:$0xff pattern:$0x75316420] }
 0x433   : > { %v2710_v13 = vpop.trf.xlu0 }
 0x434   : > { %3132 = vst [vmem:[#allocation1 + $0x11] ss:$2 sm:$0xff] %v2710_v13 }
 0x43b   : > { %v3142_v61 = vld.sshfl [vmem:[#allocation1 + $0x10] sm:$0xff pattern:$0x75316420]  ;;  %v2934_v32 = vpop.trf.xlu0 }
 0x43c   : > { %3166 = vxpose.xlu0.b32.cont [2/8] (short) (narrow) %v3142_v61, 8  ;;  %3148 = vst [vmem:[#allocation1 + $0x11] ss:$2 sm:$0xff] %v2966_v35 }
 0x43d   : > { %3147 = vst [vmem:[#allocation1 + $0x10] ss:$2 sm:$0xff] %v2934_v32 }
 0x443   : > { %v3030_v18 = vpop.trf.xlu0 }
 0x444   : > { %3167 = vxpose.xlu0.b32.cont [3/8] (short) (narrow) %v3143_v56, 8  ;;  %3150 = vst [vmem:[#allocation1 + $0x21] ss:$2 sm:$0xff] %v3030_v18  ;;  %v3154_v21 = vld.sshfl [vmem:[#allocation1 + $0x10] sm:$0xff pattern:$0x75316420] }
 0x44b   : > { %v3155_v23 = vld.sshfl [vmem:[#allocation1 + $0x20] sm:$0xff pattern:$0x75316420] }
 0x44c   : > { %3168 = vxpose.xlu0.b32.cont [4/8] (short) (narrow) %v3144_v17, 8 }
 0x454   : > { %3169 = vxpose.xlu0.b32.cont [5/8] (short) (narrow) %v3153_v22, 8 }
 0x45c   : > { %3170 = vxpose.xlu0.b32.cont [6/8] (short) (narrow) %v3154_v21, 8 }
 0x464   : > { %3171 = vxpose.xlu0.b32.cont [7/8] (short) (narrow) %v3155_v23, 8 }
 0x46c   : > { %3172 = vxpose.xlu0.b32.end [8/8] (short) (narrow) %v3156_v5, 8 }
 0x4d8   : > { %v3181_v24 = vpop.trf.xlu0 }
 0x4d9   : > { %3197 = vst.msk [vmem:[%s3879_s19 + $0xf] sm:$0xf] %vm921_vm3, %v3181_v24 }
 0x4da PF: > { %s14_s11 = sadd.s32 1, %s3463_s11   ;;  %s3975_s6 = smov %s3447_s7 }
 0x4db   : > { %p11_p0 = scmp.ge.s32.totalorder %s14_s11, 4   ;;  %s3976_s7 = smov %s3451_s8 }
 0x4dc   : > { %s3977_s8 = smov %s3532_s18  ;;  %s3978_s9 = smov %s3459_s10 }
 0x4dd   : > { %s3979_s10 = smov %s3981_s13  ;;  %13 = sbr.rel (!%p11_p0) target bundleno = 4 (0x4), region = 95 }
 0x4e2   :  { %3228 = vsyncpa [#allocation3], 1 }
 0x4e3   :  { %3230 = vsyncpa [#allocation3 + $0x1], 1 }

</bundles_post_ra>
